<compile_context>
chip_gen: v7x
topology: tpu7x:2x2x1
jax: 0.10.0
libtpu: 0.0.40
codegen_flags: <defaults>
</compile_context>

<pallas_src>
import numpy as np
import jax
import jax.numpy as jnp
from jax.experimental import pallas as pl
from jax.experimental.pallas import tpu as pltpu

# Model dims (from the PyTorch module: D_in = sequence_size*25, D_out = 3)
SEQ = 3
D_IN = SEQ * 25        # 75
H = 32
H2 = 32
D_OUT = 3
NUM_LAYERS = 5         # torch.nn.LSTM(H, H2, 5)
G = 4 * H2             # packed gate width = 128
LANES = 128
assert G == LANES and H == H2

# ---- packed parameter slab layout (rows of a (SLAB_ROWS, 128) f32 array) ----
R_WX0 = 0                                # (128, 128) folded W1 @ Wih0 (rows >= D_IN are zero)
R_BIAS = R_WX0 + LANES                   # (8, 128)   row l = combined gate bias of layer l
R_WIH = R_BIAS + 8                       # (128, 128) Wih layers 1..4, layer l at rows (l-1)*32
R_WHH = R_WIH + (NUM_LAYERS - 1) * H2    # (160, 128) Whh layers 0..4, layer l at rows l*32
R_W23 = R_WHH + NUM_LAYERS * H2          # (32, 128)  folded W2 @ W3, lane-padded
R_B23 = R_W23 + H2                       # (8, 128)   row 0 = folded b2 @ W3 + b3, lane-padded
SLAB_ROWS = R_B23 + 8                    # 464


def _sigmoid(x):
    # logistic via tanh: exact math identity, runs on the EUP (no f32 divide).
    return 0.5 * (jnp.tanh(0.5 * x) + 1.0)


def twolayernet_kernel(x_ref, state_ref, slab_ref, out_ref, state_out_ref):
    """x_ref:(1,128)  state_ref:(L,128)[h|c|0]  slab_ref:(464,128) -> out:(1,128), state:(L,128)."""
    f32 = jnp.float32

    x = x_ref[...]                          # (1, 128), lanes >= D_IN are zero
    state = state_ref[...]                  # read the WHOLE state up front (safe with aliasing)
    h0 = state[:, 0:H2]                     # (L, 32)
    c0 = state[:, H2:2 * H2]                # (L, 32)

    bias = slab_ref[R_BIAS:R_BIAS + 8, :]   # (8, 128); row l = per-layer combined gate bias

    # Hoisted recurrent matmuls: h0[l] @ Whh[l] depend only on the initial state, so the
    # 5 pushes are independent and pipeline back-to-back on the MXU(s).
    hh_pre = [
        jnp.dot(h0[l:l + 1, :],
                slab_ref[R_WHH + 32 * l:R_WHH + 32 * (l + 1), :],
                preferred_element_type=f32)
        for l in range(NUM_LAYERS)
    ]

    h_rows = []
    c_rows = []
    inp = x
    for l in range(NUM_LAYERS):
        if l == 0:
            # layer 0 input weights already have linear1 folded in (x @ (W1 @ Wih0))
            wx = slab_ref[R_WX0:R_WX0 + LANES, :]                       # (128, 128)
        else:
            wx = slab_ref[R_WIH + 32 * (l - 1):R_WIH + 32 * l, :]       # (32, 128)

        gates = (jnp.dot(inp, wx, preferred_element_type=f32)
                 + hh_pre[l] + bias[l:l + 1, :])                        # (1, 128) [i|f|o|g]

        sig = _sigmoid(gates[:, 0:3 * H2])                              # one contiguous (1, 96)
        i_g = sig[:, 0:H2]
        f_g = sig[:, H2:2 * H2]
        o_g = sig[:, 2 * H2:3 * H2]
        g_g = jnp.tanh(gates[:, 3 * H2:G])                              # (1, 32)

        c_new = f_g * c0[l:l + 1, :] + i_g * g_g
        h_new = o_g * jnp.tanh(c_new)
        h_rows.append(h_new)
        c_rows.append(c_new)
        inp = h_new                                                     # feed next layer

    # folded linear2 + "tanh"-Linear head: single (1,32) @ (32,128) matmul, lane-padded output
    w23 = slab_ref[R_W23:R_W23 + H2, :]        # (32, 128)
    b23 = slab_ref[R_B23:R_B23 + 1, :]         # (1, 128)
    out_ref[...] = jnp.dot(inp, w23, preferred_element_type=f32) + b23

    # lane-dense full-width store of the packed new state [h | c | 0]
    hs = jnp.concatenate(h_rows, axis=0)                                # (L, 32)
    cs = jnp.concatenate(c_rows, axis=0)                                # (L, 32)
    pad = jnp.zeros((NUM_LAYERS, LANES - 2 * H2), f32)                  # (L, 64)
    state_out_ref[...] = jnp.concatenate([hs, cs, pad], axis=1)         # (L, 128)


def init_params(key):
    """Deterministic PyTorch-style uniform(-1/sqrt(fan_in), 1/sqrt(fan_in)) init.

    Dense weights stored as (in_features, out_features); LSTM gate columns packed
    [i | f | g | o] along the last axis, matching PyTorch ordering.
    """
    ks = jax.random.split(key, 11)

    def unif(k, shape, fan_in):
        bound = 1.0 / np.sqrt(fan_in)
        return jax.random.uniform(k, shape, jnp.float32, -bound, bound)

    w1 = unif(ks[0], (D_IN, H), D_IN)
    b1 = unif(ks[1], (1, H), D_IN)
    wih0 = unif(ks[2], (H, 4 * H2), H2)
    wih = unif(ks[3], (NUM_LAYERS - 1, H2, 4 * H2), H2)
    whh = unif(ks[4], (NUM_LAYERS, H2, 4 * H2), H2)
    bih = unif(ks[5], (NUM_LAYERS, 1, 4 * H2), H2)
    bhh = unif(ks[6], (NUM_LAYERS, 1, 4 * H2), H2)
    w2 = unif(ks[7], (H2, H), H2)
    b2 = unif(ks[8], (1, H), H2)
    w3 = unif(ks[9], (H, D_OUT), H)
    b3 = unif(ks[10], (1, D_OUT), H)
    return (w1, b1, wih0, wih, whh, bih, bhh, w2, b2, w3, b3)


def pack_params(params):
    """One-time offline folding / gate-reorder / packing into a single (464, 128) f32 slab."""
    (w1, b1, wih0, wih, whh, bih, bhh, w2, b2, w3, b3) = params

    def reorder(a):  # gate columns [i|f|g|o] -> [i|f|o|g]
        return jnp.concatenate([a[..., :2 * H2], a[..., 3 * H2:], a[..., 2 * H2:3 * H2]], axis=-1)

    wih0_p = reorder(wih0)                    # (32, 128)
    wih_p = reorder(wih)                      # (4, 32, 128)
    whh_p = reorder(whh)                      # (5, 32, 128)
    b_p = reorder(bih + bhh)                  # (5, 1, 128)

    # fold linear1 into the layer-0 input weights
    wx0 = w1 @ wih0_p                                              # (75, 128)
    wx0 = jnp.pad(wx0, ((0, LANES - D_IN), (0, 0)))                # (128, 128)
    bx0 = b1 @ wih0_p + b_p[0]                                     # (1, 128)

    bias = jnp.concatenate([bx0] + [b_p[l] for l in range(1, NUM_LAYERS)], axis=0)  # (5, 128)
    bias = jnp.pad(bias, ((0, 8 - NUM_LAYERS), (0, 0)))            # (8, 128)

    wih_blk = wih_p.reshape((NUM_LAYERS - 1) * H2, G)              # (128, 128)
    whh_blk = whh_p.reshape(NUM_LAYERS * H2, G)                    # (160, 128)

    # fold linear2 and the "tanh" Linear head
    w23 = jnp.pad(w2 @ w3, ((0, 0), (0, LANES - D_OUT)))           # (32, 128)
    b23 = jnp.pad(b2 @ w3 + b3, ((0, 7), (0, LANES - D_OUT)))      # (8, 128)

    slab = jnp.concatenate([wx0, bias, wih_blk, whh_blk, w23, b23], axis=0).astype(jnp.float32)
    assert slab.shape == (SLAB_ROWS, LANES), slab.shape
    return slab


@jax.jit
def _forward_jit(x_flat, h0, c0, slab):
    x_pad = jnp.pad(x_flat, ((0, 0), (0, LANES - D_IN)))                       # (1, 128)
    state_in = jnp.concatenate(
        [h0[:, 0, :], c0[:, 0, :],
         jnp.zeros((NUM_LAYERS, LANES - 2 * H2), jnp.float32)], axis=1)        # (L, 128)

    out_pad, state_new = pl.pallas_call(
        twolayernet_kernel,
        out_shape=(
            jax.ShapeDtypeStruct((1, LANES), jnp.float32),
            jax.ShapeDtypeStruct((NUM_LAYERS, LANES), jnp.float32),
        ),
        in_specs=[pl.BlockSpec(memory_space=pltpu.MemorySpace.VMEM)] * 3,
        out_specs=(pl.BlockSpec(memory_space=pltpu.MemorySpace.VMEM),) * 2,
        input_output_aliases={1: 1},   # donate packed LSTM state into the new-state output
    )(x_pad, state_in, slab)

    out2 = out_pad[:, :D_OUT]
    hn = state_new[:, :H2].reshape(NUM_LAYERS, 1, H2)
    cn = state_new[:, H2:2 * H2].reshape(NUM_LAYERS, 1, H2)
    return out2, hn, cn


def two_layer_net_forward(x, slab, hidden=None):
    """Returns (output2, (h_n, c_n)) exactly like the PyTorch module. `slab` = pack_params(params)."""
    x_flat = x.reshape(1, -1).astype(jnp.float32)                  # x.view(1, -1)
    if hidden is None:
        h0 = jnp.zeros((NUM_LAYERS, 1, H2), jnp.float32)
        c0 = jnp.zeros((NUM_LAYERS, 1, H2), jnp.float32)
    else:
        h0, c0 = hidden
    out2, hn, cn = _forward_jit(x_flat, h0, c0, slab)
    return out2, (hn, cn)


def reference_forward(x, params, hidden=None):
    """Pure-JAX reference mirroring PyTorch semantics (unfolded, original gate order)."""
    (w1, b1, wih0, wih, whh, bih, bhh, w2, b2, w3, b3) = params
    inp = x.reshape(1, -1) @ w1 + b1
    h0 = jnp.zeros((NUM_LAYERS, 1, H2)) if hidden is None else hidden[0]
    c0 = jnp.zeros((NUM_LAYERS, 1, H2)) if hidden is None else hidden[1]
    hn, cn = [], []
    for l in range(NUM_LAYERS):
        wihl = wih0 if l == 0 else wih[l - 1]
        gates = inp @ wihl + h0[l] @ whh[l] + bih[l] + bhh[l]
        i = jax.nn.sigmoid(gates[:, :H2])
        f = jax.nn.sigmoid(gates[:, H2:2 * H2])
        g = jnp.tanh(gates[:, 2 * H2:3 * H2])
        o = jax.nn.sigmoid(gates[:, 3 * H2:])
        c = f * c0[l] + i * g
        h = o * jnp.tanh(c)
        hn.append(h)
        cn.append(c)
        inp = h
    mid = inp @ w2 + b2
    out2 = mid @ w3 + b3
    return out2, (jnp.stack(hn), jnp.stack(cn))


if __name__ == "__main__":
    key = jax.random.PRNGKey(0)
    k_x1, k_x2, k_p = jax.random.split(key, 3)

    # x: (sequence_size, 25) -> forward flattens it to (1, 75)
    x1 = jax.random.normal(k_x1, (SEQ, 25), jnp.float32)
    x2 = jax.random.normal(k_x2, (SEQ, 25), jnp.float32)
    params = init_params(k_p)
    slab = pack_params(params)          # one-time offline fold/repack

    # step 1: hidden=None
    out2_a, (hn_a, cn_a) = two_layer_net_forward(x1, slab, hidden=None)
    jax.block_until_ready((out2_a, hn_a, cn_a))

    ref_out_a, (ref_hn_a, ref_cn_a) = reference_forward(x1, params, hidden=None)
    np.testing.assert_allclose(np.asarray(out2_a), np.asarray(ref_out_a), atol=2e-5, rtol=2e-5)
    np.testing.assert_allclose(np.asarray(hn_a), np.asarray(ref_hn_a), atol=2e-5, rtol=2e-5)
    np.testing.assert_allclose(np.asarray(cn_a), np.asarray(ref_cn_a), atol=2e-5, rtol=2e-5)

    # step 2: carry the hidden state (exercises the hidden path + state packing/aliasing)
    out2_b, (hn_b, cn_b) = two_layer_net_forward(x2, slab, hidden=(hn_a, cn_a))
    jax.block_until_ready((out2_b, hn_b, cn_b))

    ref_out_b, (ref_hn_b, ref_cn_b) = reference_forward(x2, params, hidden=(ref_hn_a, ref_cn_a))
    np.testing.assert_allclose(np.asarray(out2_b), np.asarray(ref_out_b), atol=1e-4, rtol=1e-4)
    np.testing.assert_allclose(np.asarray(hn_b), np.asarray(ref_hn_b), atol=1e-4, rtol=1e-4)
    np.testing.assert_allclose(np.asarray(cn_b), np.asarray(ref_cn_b), atol=1e-4, rtol=1e-4)

    print("KERNEL_OK")
</pallas_src>

<mosaic_0001>
module attributes {stable_mosaic.version = 11 : i64} {
  func.func @twolayernet_kernel(%arg0: memref<1x128xf32, #tpu.memory_space<vmem>>, %arg1: memref<5x128xf32, #tpu.memory_space<vmem>>, %arg2: memref<464x128xf32, #tpu.memory_space<vmem>>, %arg3: memref<1x128xf32, #tpu.memory_space<vmem>>, %arg4: memref<5x128xf32, #tpu.memory_space<vmem>>) attributes {dimension_semantics = [], scalar_prefetch = 0 : i64, scratch_operands = 0 : i64, tpu.core_type = #tpu.core_type<tc>} {
    %c0 = arith.constant 0 : index
    %c0_0 = arith.constant 0 : index
    %0 = vector.load %arg0[%c0, %c0_0] : memref<1x128xf32, #tpu.memory_space<vmem>>, vector<1x128xf32>
    %c0_1 = arith.constant 0 : index
    %c0_2 = arith.constant 0 : index
    %1 = vector.load %arg1[%c0_1, %c0_2] : memref<5x128xf32, #tpu.memory_space<vmem>>, vector<5x128xf32>
    %2 = vector.extract_strided_slice %1 {offsets = [0, 0], sizes = [5, 32], strides = [1, 1]} : vector<5x128xf32> to vector<5x32xf32>
    %3 = vector.extract_strided_slice %1 {offsets = [0, 32], sizes = [5, 32], strides = [1, 1]} : vector<5x128xf32> to vector<5x32xf32>
    %c128 = arith.constant 128 : index
    %c0_3 = arith.constant 0 : index
    %4 = vector.load %arg2[%c128, %c0_3] : memref<464x128xf32, #tpu.memory_space<vmem>>, vector<8x128xf32>
    %5 = vector.extract_strided_slice %2 {offsets = [0, 0], sizes = [1, 32], strides = [1, 1]} : vector<5x32xf32> to vector<1x32xf32>
    %c264 = arith.constant 264 : index
    %c0_4 = arith.constant 0 : index
    %6 = vector.load %arg2[%c264, %c0_4] : memref<464x128xf32, #tpu.memory_space<vmem>>, vector<32x128xf32>
    %cst = arith.constant dense<0.000000e+00> : vector<1x128xf32>
    %7 = tpu.matmul %5, %6, %cst {dimension_numbers = #tpu.dot_dimension_numbers<[1], [0], [0], [1], [0, 0, 1, 1], [], []>} : vector<1x32xf32>, vector<32x128xf32>, vector<1x128xf32> -> vector<1x128xf32>
    %8 = vector.extract_strided_slice %2 {offsets = [1, 0], sizes = [1, 32], strides = [1, 1]} : vector<5x32xf32> to vector<1x32xf32>
    %c296 = arith.constant 296 : index
    %c0_5 = arith.constant 0 : index
    %9 = vector.load %arg2[%c296, %c0_5] : memref<464x128xf32, #tpu.memory_space<vmem>>, vector<32x128xf32>
    %cst_6 = arith.constant dense<0.000000e+00> : vector<1x128xf32>
    %10 = tpu.matmul %8, %9, %cst_6 {dimension_numbers = #tpu.dot_dimension_numbers<[1], [0], [0], [1], [0, 0, 1, 1], [], []>} : vector<1x32xf32>, vector<32x128xf32>, vector<1x128xf32> -> vector<1x128xf32>
    %11 = vector.extract_strided_slice %2 {offsets = [2, 0], sizes = [1, 32], strides = [1, 1]} : vector<5x32xf32> to vector<1x32xf32>
    %c328 = arith.constant 328 : index
    %c0_7 = arith.constant 0 : index
    %12 = vector.load %arg2[%c328, %c0_7] : memref<464x128xf32, #tpu.memory_space<vmem>>, vector<32x128xf32>
    %cst_8 = arith.constant dense<0.000000e+00> : vector<1x128xf32>
    %13 = tpu.matmul %11, %12, %cst_8 {dimension_numbers = #tpu.dot_dimension_numbers<[1], [0], [0], [1], [0, 0, 1, 1], [], []>} : vector<1x32xf32>, vector<32x128xf32>, vector<1x128xf32> -> vector<1x128xf32>
    %14 = vector.extract_strided_slice %2 {offsets = [3, 0], sizes = [1, 32], strides = [1, 1]} : vector<5x32xf32> to vector<1x32xf32>
    %c360 = arith.constant 360 : index
    %c0_9 = arith.constant 0 : index
    %15 = vector.load %arg2[%c360, %c0_9] : memref<464x128xf32, #tpu.memory_space<vmem>>, vector<32x128xf32>
    %cst_10 = arith.constant dense<0.000000e+00> : vector<1x128xf32>
    %16 = tpu.matmul %14, %15, %cst_10 {dimension_numbers = #tpu.dot_dimension_numbers<[1], [0], [0], [1], [0, 0, 1, 1], [], []>} : vector<1x32xf32>, vector<32x128xf32>, vector<1x128xf32> -> vector<1x128xf32>
    %17 = vector.extract_strided_slice %2 {offsets = [4, 0], sizes = [1, 32], strides = [1, 1]} : vector<5x32xf32> to vector<1x32xf32>
    %c392 = arith.constant 392 : index
    %c0_11 = arith.constant 0 : index
    %18 = vector.load %arg2[%c392, %c0_11] : memref<464x128xf32, #tpu.memory_space<vmem>>, vector<32x128xf32>
    %cst_12 = arith.constant dense<0.000000e+00> : vector<1x128xf32>
    %19 = tpu.matmul %17, %18, %cst_12 {dimension_numbers = #tpu.dot_dimension_numbers<[1], [0], [0], [1], [0, 0, 1, 1], [], []>} : vector<1x32xf32>, vector<32x128xf32>, vector<1x128xf32> -> vector<1x128xf32>
    %c0_13 = arith.constant 0 : index
    %c0_14 = arith.constant 0 : index
    %20 = vector.load %arg2[%c0_13, %c0_14] : memref<464x128xf32, #tpu.memory_space<vmem>>, vector<128x128xf32>
    %cst_15 = arith.constant dense<0.000000e+00> : vector<1x128xf32>
    %21 = tpu.matmul %0, %20, %cst_15 {dimension_numbers = #tpu.dot_dimension_numbers<[1], [0], [0], [1], [0, 0, 1, 1], [], []>} : vector<1x128xf32>, vector<128x128xf32>, vector<1x128xf32> -> vector<1x128xf32>
    %22 = arith.addf %21, %7 : vector<1x128xf32>
    %23 = vector.extract_strided_slice %4 {offsets = [0, 0], sizes = [1, 128], strides = [1, 1]} : vector<8x128xf32> to vector<1x128xf32>
    %24 = arith.addf %22, %23 : vector<1x128xf32>
    %25 = vector.extract_strided_slice %24 {offsets = [0, 0], sizes = [1, 96], strides = [1, 1]} : vector<1x128xf32> to vector<1x96xf32>
    %cst_16 = arith.constant 5.000000e-01 : f32
    %26 = vector.broadcast %cst_16 : f32 to vector<1x96xf32>
    %27 = arith.mulf %26, %25 : vector<1x96xf32>
    %28 = math.tanh %27 : vector<1x96xf32>
    %cst_17 = arith.constant 1.000000e+00 : f32
    %29 = vector.broadcast %cst_17 : f32 to vector<1x96xf32>
    %30 = arith.addf %28, %29 : vector<1x96xf32>
    %cst_18 = arith.constant 5.000000e-01 : f32
    %31 = vector.broadcast %cst_18 : f32 to vector<1x96xf32>
    %32 = arith.mulf %31, %30 : vector<1x96xf32>
    %33 = vector.extract_strided_slice %32 {offsets = [0, 0], sizes = [1, 32], strides = [1, 1]} : vector<1x96xf32> to vector<1x32xf32>
    %34 = vector.extract_strided_slice %32 {offsets = [0, 32], sizes = [1, 32], strides = [1, 1]} : vector<1x96xf32> to vector<1x32xf32>
    %35 = vector.extract_strided_slice %32 {offsets = [0, 64], sizes = [1, 32], strides = [1, 1]} : vector<1x96xf32> to vector<1x32xf32>
    %36 = vector.extract_strided_slice %24 {offsets = [0, 96], sizes = [1, 32], strides = [1, 1]} : vector<1x128xf32> to vector<1x32xf32>
    %37 = math.tanh %36 : vector<1x32xf32>
    %38 = vector.extract_strided_slice %3 {offsets = [0, 0], sizes = [1, 32], strides = [1, 1]} : vector<5x32xf32> to vector<1x32xf32>
    %39 = arith.mulf %34, %38 : vector<1x32xf32>
    %40 = arith.mulf %33, %37 : vector<1x32xf32>
    %41 = arith.addf %39, %40 : vector<1x32xf32>
    %42 = math.tanh %41 : vector<1x32xf32>
    %43 = arith.mulf %35, %42 : vector<1x32xf32>
    %c136 = arith.constant 136 : index
    %c0_19 = arith.constant 0 : index
    %44 = vector.load %arg2[%c136, %c0_19] : memref<464x128xf32, #tpu.memory_space<vmem>>, vector<32x128xf32>
    %cst_20 = arith.constant dense<0.000000e+00> : vector<1x128xf32>
    %45 = tpu.matmul %43, %44, %cst_20 {dimension_numbers = #tpu.dot_dimension_numbers<[1], [0], [0], [1], [0, 0, 1, 1], [], []>} : vector<1x32xf32>, vector<32x128xf32>, vector<1x128xf32> -> vector<1x128xf32>
    %46 = arith.addf %45, %10 : vector<1x128xf32>
    %47 = vector.extract_strided_slice %4 {offsets = [1, 0], sizes = [1, 128], strides = [1, 1]} : vector<8x128xf32> to vector<1x128xf32>
    %48 = arith.addf %46, %47 : vector<1x128xf32>
    %49 = vector.extract_strided_slice %48 {offsets = [0, 0], sizes = [1, 96], strides = [1, 1]} : vector<1x128xf32> to vector<1x96xf32>
    %cst_21 = arith.constant 5.000000e-01 : f32
    %50 = vector.broadcast %cst_21 : f32 to vector<1x96xf32>
    %51 = arith.mulf %50, %49 : vector<1x96xf32>
    %52 = math.tanh %51 : vector<1x96xf32>
    %cst_22 = arith.constant 1.000000e+00 : f32
    %53 = vector.broadcast %cst_22 : f32 to vector<1x96xf32>
    %54 = arith.addf %52, %53 : vector<1x96xf32>
    %cst_23 = arith.constant 5.000000e-01 : f32
    %55 = vector.broadcast %cst_23 : f32 to vector<1x96xf32>
    %56 = arith.mulf %55, %54 : vector<1x96xf32>
    %57 = vector.extract_strided_slice %56 {offsets = [0, 0], sizes = [1, 32], strides = [1, 1]} : vector<1x96xf32> to vector<1x32xf32>
    %58 = vector.extract_strided_slice %56 {offsets = [0, 32], sizes = [1, 32], strides = [1, 1]} : vector<1x96xf32> to vector<1x32xf32>
    %59 = vector.extract_strided_slice %56 {offsets = [0, 64], sizes = [1, 32], strides = [1, 1]} : vector<1x96xf32> to vector<1x32xf32>
    %60 = vector.extract_strided_slice %48 {offsets = [0, 96], sizes = [1, 32], strides = [1, 1]} : vector<1x128xf32> to vector<1x32xf32>
    %61 = math.tanh %60 : vector<1x32xf32>
    %62 = vector.extract_strided_slice %3 {offsets = [1, 0], sizes = [1, 32], strides = [1, 1]} : vector<5x32xf32> to vector<1x32xf32>
    %63 = arith.mulf %58, %62 : vector<1x32xf32>
    %64 = arith.mulf %57, %61 : vector<1x32xf32>
    %65 = arith.addf %63, %64 : vector<1x32xf32>
    %66 = math.tanh %65 : vector<1x32xf32>
    %67 = arith.mulf %59, %66 : vector<1x32xf32>
    %c168 = arith.constant 168 : index
    %c0_24 = arith.constant 0 : index
    %68 = vector.load %arg2[%c168, %c0_24] : memref<464x128xf32, #tpu.memory_space<vmem>>, vector<32x128xf32>
    %cst_25 = arith.constant dense<0.000000e+00> : vector<1x128xf32>
    %69 = tpu.matmul %67, %68, %cst_25 {dimension_numbers = #tpu.dot_dimension_numbers<[1], [0], [0], [1], [0, 0, 1, 1], [], []>} : vector<1x32xf32>, vector<32x128xf32>, vector<1x128xf32> -> vector<1x128xf32>
    %70 = arith.addf %69, %13 : vector<1x128xf32>
    %71 = vector.extract_strided_slice %4 {offsets = [2, 0], sizes = [1, 128], strides = [1, 1]} : vector<8x128xf32> to vector<1x128xf32>
    %72 = arith.addf %70, %71 : vector<1x128xf32>
    %73 = vector.extract_strided_slice %72 {offsets = [0, 0], sizes = [1, 96], strides = [1, 1]} : vector<1x128xf32> to vector<1x96xf32>
    %cst_26 = arith.constant 5.000000e-01 : f32
    %74 = vector.broadcast %cst_26 : f32 to vector<1x96xf32>
    %75 = arith.mulf %74, %73 : vector<1x96xf32>
    %76 = math.tanh %75 : vector<1x96xf32>
    %cst_27 = arith.constant 1.000000e+00 : f32
    %77 = vector.broadcast %cst_27 : f32 to vector<1x96xf32>
    %78 = arith.addf %76, %77 : vector<1x96xf32>
    %cst_28 = arith.constant 5.000000e-01 : f32
    %79 = vector.broadcast %cst_28 : f32 to vector<1x96xf32>
    %80 = arith.mulf %79, %78 : vector<1x96xf32>
    %81 = vector.extract_strided_slice %80 {offsets = [0, 0], sizes = [1, 32], strides = [1, 1]} : vector<1x96xf32> to vector<1x32xf32>
    %82 = vector.extract_strided_slice %80 {offsets = [0, 32], sizes = [1, 32], strides = [1, 1]} : vector<1x96xf32> to vector<1x32xf32>
    %83 = vector.extract_strided_slice %80 {offsets = [0, 64], sizes = [1, 32], strides = [1, 1]} : vector<1x96xf32> to vector<1x32xf32>
    %84 = vector.extract_strided_slice %72 {offsets = [0, 96], sizes = [1, 32], strides = [1, 1]} : vector<1x128xf32> to vector<1x32xf32>
    %85 = math.tanh %84 : vector<1x32xf32>
    %86 = vector.extract_strided_slice %3 {offsets = [2, 0], sizes = [1, 32], strides = [1, 1]} : vector<5x32xf32> to vector<1x32xf32>
    %87 = arith.mulf %82, %86 : vector<1x32xf32>
    %88 = arith.mulf %81, %85 : vector<1x32xf32>
    %89 = arith.addf %87, %88 : vector<1x32xf32>
    %90 = math.tanh %89 : vector<1x32xf32>
    %91 = arith.mulf %83, %90 : vector<1x32xf32>
    %c200 = arith.constant 200 : index
    %c0_29 = arith.constant 0 : index
    %92 = vector.load %arg2[%c200, %c0_29] : memref<464x128xf32, #tpu.memory_space<vmem>>, vector<32x128xf32>
    %cst_30 = arith.constant dense<0.000000e+00> : vector<1x128xf32>
    %93 = tpu.matmul %91, %92, %cst_30 {dimension_numbers = #tpu.dot_dimension_numbers<[1], [0], [0], [1], [0, 0, 1, 1], [], []>} : vector<1x32xf32>, vector<32x128xf32>, vector<1x128xf32> -> vector<1x128xf32>
    %94 = arith.addf %93, %16 : vector<1x128xf32>
    %95 = vector.extract_strided_slice %4 {offsets = [3, 0], sizes = [1, 128], strides = [1, 1]} : vector<8x128xf32> to vector<1x128xf32>
    %96 = arith.addf %94, %95 : vector<1x128xf32>
    %97 = vector.extract_strided_slice %96 {offsets = [0, 0], sizes = [1, 96], strides = [1, 1]} : vector<1x128xf32> to vector<1x96xf32>
    %cst_31 = arith.constant 5.000000e-01 : f32
    %98 = vector.broadcast %cst_31 : f32 to vector<1x96xf32>
    %99 = arith.mulf %98, %97 : vector<1x96xf32>
    %100 = math.tanh %99 : vector<1x96xf32>
    %cst_32 = arith.constant 1.000000e+00 : f32
    %101 = vector.broadcast %cst_32 : f32 to vector<1x96xf32>
    %102 = arith.addf %100, %101 : vector<1x96xf32>
    %cst_33 = arith.constant 5.000000e-01 : f32
    %103 = vector.broadcast %cst_33 : f32 to vector<1x96xf32>
    %104 = arith.mulf %103, %102 : vector<1x96xf32>
    %105 = vector.extract_strided_slice %104 {offsets = [0, 0], sizes = [1, 32], strides = [1, 1]} : vector<1x96xf32> to vector<1x32xf32>
    %106 = vector.extract_strided_slice %104 {offsets = [0, 32], sizes = [1, 32], strides = [1, 1]} : vector<1x96xf32> to vector<1x32xf32>
    %107 = vector.extract_strided_slice %104 {offsets = [0, 64], sizes = [1, 32], strides = [1, 1]} : vector<1x96xf32> to vector<1x32xf32>
    %108 = vector.extract_strided_slice %96 {offsets = [0, 96], sizes = [1, 32], strides = [1, 1]} : vector<1x128xf32> to vector<1x32xf32>
    %109 = math.tanh %108 : vector<1x32xf32>
    %110 = vector.extract_strided_slice %3 {offsets = [3, 0], sizes = [1, 32], strides = [1, 1]} : vector<5x32xf32> to vector<1x32xf32>
    %111 = arith.mulf %106, %110 : vector<1x32xf32>
    %112 = arith.mulf %105, %109 : vector<1x32xf32>
    %113 = arith.addf %111, %112 : vector<1x32xf32>
    %114 = math.tanh %113 : vector<1x32xf32>
    %115 = arith.mulf %107, %114 : vector<1x32xf32>
    %c232 = arith.constant 232 : index
    %c0_34 = arith.constant 0 : index
    %116 = vector.load %arg2[%c232, %c0_34] : memref<464x128xf32, #tpu.memory_space<vmem>>, vector<32x128xf32>
    %cst_35 = arith.constant dense<0.000000e+00> : vector<1x128xf32>
    %117 = tpu.matmul %115, %116, %cst_35 {dimension_numbers = #tpu.dot_dimension_numbers<[1], [0], [0], [1], [0, 0, 1, 1], [], []>} : vector<1x32xf32>, vector<32x128xf32>, vector<1x128xf32> -> vector<1x128xf32>
    %118 = arith.addf %117, %19 : vector<1x128xf32>
    %119 = vector.extract_strided_slice %4 {offsets = [4, 0], sizes = [1, 128], strides = [1, 1]} : vector<8x128xf32> to vector<1x128xf32>
    %120 = arith.addf %118, %119 : vector<1x128xf32>
    %121 = vector.extract_strided_slice %120 {offsets = [0, 0], sizes = [1, 96], strides = [1, 1]} : vector<1x128xf32> to vector<1x96xf32>
    %cst_36 = arith.constant 5.000000e-01 : f32
    %122 = vector.broadcast %cst_36 : f32 to vector<1x96xf32>
    %123 = arith.mulf %122, %121 : vector<1x96xf32>
    %124 = math.tanh %123 : vector<1x96xf32>
    %cst_37 = arith.constant 1.000000e+00 : f32
    %125 = vector.broadcast %cst_37 : f32 to vector<1x96xf32>
    %126 = arith.addf %124, %125 : vector<1x96xf32>
    %cst_38 = arith.constant 5.000000e-01 : f32
    %127 = vector.broadcast %cst_38 : f32 to vector<1x96xf32>
    %128 = arith.mulf %127, %126 : vector<1x96xf32>
    %129 = vector.extract_strided_slice %128 {offsets = [0, 0], sizes = [1, 32], strides = [1, 1]} : vector<1x96xf32> to vector<1x32xf32>
    %130 = vector.extract_strided_slice %128 {offsets = [0, 32], sizes = [1, 32], strides = [1, 1]} : vector<1x96xf32> to vector<1x32xf32>
    %131 = vector.extract_strided_slice %128 {offsets = [0, 64], sizes = [1, 32], strides = [1, 1]} : vector<1x96xf32> to vector<1x32xf32>
    %132 = vector.extract_strided_slice %120 {offsets = [0, 96], sizes = [1, 32], strides = [1, 1]} : vector<1x128xf32> to vector<1x32xf32>
    %133 = math.tanh %132 : vector<1x32xf32>
    %134 = vector.extract_strided_slice %3 {offsets = [4, 0], sizes = [1, 32], strides = [1, 1]} : vector<5x32xf32> to vector<1x32xf32>
    %135 = arith.mulf %130, %134 : vector<1x32xf32>
    %136 = arith.mulf %129, %133 : vector<1x32xf32>
    %137 = arith.addf %135, %136 : vector<1x32xf32>
    %138 = math.tanh %137 : vector<1x32xf32>
    %139 = arith.mulf %131, %138 : vector<1x32xf32>
    %c424 = arith.constant 424 : index
    %c0_39 = arith.constant 0 : index
    %140 = vector.load %arg2[%c424, %c0_39] : memref<464x128xf32, #tpu.memory_space<vmem>>, vector<32x128xf32>
    %c456 = arith.constant 456 : index
    %c0_40 = arith.constant 0 : index
    %141 = vector.load %arg2[%c456, %c0_40] : memref<464x128xf32, #tpu.memory_space<vmem>>, vector<1x128xf32>
    %cst_41 = arith.constant dense<0.000000e+00> : vector<1x128xf32>
    %142 = tpu.matmul %139, %140, %cst_41 {dimension_numbers = #tpu.dot_dimension_numbers<[1], [0], [0], [1], [0, 0, 1, 1], [], []>} : vector<1x32xf32>, vector<32x128xf32>, vector<1x128xf32> -> vector<1x128xf32>
    %143 = arith.addf %142, %141 : vector<1x128xf32>
    %c0_42 = arith.constant 0 : index
    %c0_43 = arith.constant 0 : index
    %144 = vector.load %arg3[%c0_42, %c0_43] : memref<1x128xf32, #tpu.memory_space<vmem>>, vector<1x128xf32>
    tpu.vector_store %arg3[%c0_42, %c0_43], %143 {strides = array<i32>} : memref<1x128xf32, #tpu.memory_space<vmem>>, vector<1x128xf32>,
    %145 = tpu.concatenate %43, %67, %91, %115, %139 in 0 : vector<1x32xf32>, vector<1x32xf32>, vector<1x32xf32>, vector<1x32xf32>, vector<1x32xf32> -> vector<5x32xf32>
    %146 = tpu.concatenate %41, %65, %89, %113, %137 in 0 : vector<1x32xf32>, vector<1x32xf32>, vector<1x32xf32>, vector<1x32xf32>, vector<1x32xf32> -> vector<5x32xf32>
    %cst_44 = arith.constant 0.000000e+00 : f32
    %147 = vector.broadcast %cst_44 : f32 to vector<5x64xf32>
    %148 = tpu.concatenate %145, %146, %147 in 1 : vector<5x32xf32>, vector<5x32xf32>, vector<5x64xf32> -> vector<5x128xf32>
    %c0_45 = arith.constant 0 : index
    %c0_46 = arith.constant 0 : index
    %149 = vector.load %arg4[%c0_45, %c0_46] : memref<5x128xf32, #tpu.memory_space<vmem>>, vector<5x128xf32>
    tpu.vector_store %arg4[%c0_45, %c0_46], %148 {strides = array<i32>} : memref<5x128xf32, #tpu.memory_space<vmem>>, vector<5x128xf32>,
    return
  }
}

</mosaic_0001>

<bundles_post_ra>
// kernel: _forward_jit.1
= control target key start
LH: loop header
LB: loop body
LE: loop exit
PB: predicated region body
PF: predicated region fallthrough
CT: control target
= control target key end

     0   :  { %10 = vsyncpa [#allocation3], 0  ;;  %s1688_s0 = inlined_call_operand.vmem [shape: f32[1,128], index: 0, kind: input, shape index: {}]   ;;  %s1689_s1 = inlined_call_operand.vmem [shape: f32[5,128], index: 1, kind: input, shape index: {}, may-alias: {1,4}]   ;;  %s1690_s2 = inlined_call_operand.hbm [shape: f32[464,128], index: 2, kind: input, shape index: {}]   ;;  %s1691_s3 = inlined_call_operand.hbm [shape: f32[1,128], index: 3, kind: output, shape index: {0}]   ;;  %s1692_s4 = inlined_call_operand.vmem [shape: f32[5,128], index: 4, kind: output, shape index: {1}, may-alias: {1,4}]  }
   0x1   :  { %11 = vsyncpa [#allocation4], 0  ;;  %s1483_s15 = smov [#allocation2]   ;;  %s1435_s19 = scalar_lea.hbm %s1690_s2, 7424 }
   0x2   :  { %s21_s16 = sshll.u32 %s1483_s15, 4  ;;  %p1436_p0 = scmp.ne.s32.totalorder %s1690_s2, %s1435_s19  ;;  %s22_s16 = int_to_ptr.vmem [resolvable:$true] %s21_s16 }
   0x3   :  { %p1439_p1 = scmp.lt.u32.totalorder %s1435_s19, %s1690_s2 }
   0x5   :  { %p1441_p2 = pnand %p1439_p1, %p1436_p0 }
   0x7   :  { %1444 = shalt.err (!%p1441_p2)
}
   0x8   :  { %s1445_s24 = scalar_lea.vmem %s22_s16, 7424  ;;  %p1450_p4 = scmp.lt.s32.totalorder %s22_s16, %s22_s16 }
   0x9   :  { %p1446_p3 = scmp.ne.s32.totalorder %s22_s16, %s1445_s24  ;;  %p1451_p5 = scmp.lt.s32.totalorder %s1445_s24, %s1445_s24 }
   0xb   :  { %p1452_p6 = por %p1451_p5, %p1450_p4 }
   0xd   :  { %p1453_p7 = pnand %p1452_p6, %p1446_p3 }
   0xf   :  { %1456 = shalt.err (!%p1453_p7)
}
  0x10   :  { %s1484_s25 = smov 128   ;;  %s1485_s26 = smov 8  }
  0x11   :  { %27 = dma.hbm_to_vmem [thread:$0]  %s1690_s2, 7424, %s22_s16, [#allocation3], %s1484_s25, %s1484_s25, %s1485_s26  }
  0x12   :  { %1479 = dma.done.wait [#allocation3], 7424  }
  0x13   :  { %1480 = vsyncadd [#allocation3], 4294959872  ;;  %v1486_v0 = vmov 0.0|0.0   ;;  %vm1487_vm0 = vmmov 0   ;;  %v1488_v1 = vmov 0.0   ;;  %v112_v2 = vld [vmem:[#allocation2 + $0x128] sm:$0xff] }
  0x14   :  { %1318 = vmatprep.subr.bf16.mxu1 %v1486_v0  ;;  %1186 = vmatprep.mubr.msk.f32.mxu1 %vm1487_vm0, %v1488_v1  ;;  %v113_v3 = vld [vmem:[#allocation2 + $0x130] sm:$0xff]  ;;  %v114_v4 = vld [vmem:[#allocation2 + $0x138] sm:$0xff]  ;;  %v115_v6 = vld [vmem:[#allocation2 + $0x140] sm:$0xff]  ;;  %vm38_vm1 = vcmask 261120   ;;  %s1490_s5 = smov 64   ;;  %vm1039_vm2 = vcmask 1040384  }
  0x15   :  { %1312 = vmatprep.subr.bf16.mxu0 %v1486_v0  ;;  %1175 = vmatprep.mubr.msk.f32.mxu0 %vm1487_vm0, %v1488_v1  ;;  %v1319_v5 = vpack.c.bf16 %v113_v3, %v112_v2  ;;  %v1322_v7 = vpack.c.bf16 %v115_v6, %v114_v4  ;;  %v1538_v8 = vld [vmem:[%s1689_s1] sm:$0x1f]  ;;  %v266_v9 = vld [vmem:[#allocation2 + $0x168] sm:$0xff]  ;;  %v267_v10 = vld [vmem:[#allocation2 + $0x170] sm:$0xff]  ;;  %vm1041_vm3 = vcmask 1041408   ;;  %vm1043_vm4 = vcmask 1042432  }
  0x16   :  { %v116_v11 = vrot.slane %v1538_v8, 1  ;;  %v1331_v12 = vpack.c.bf16 %v267_v10, %v266_v9  ;;  %v268_v13 = vld [vmem:[#allocation2 + $0x178] sm:$0xff]  ;;  %v34_v14 = vld [vmem:[#allocation2 + $0x108] sm:$0xff]  ;;  %v35_v15 = vld [vmem:[#allocation2 + $0x110] sm:$0xff]  ;;  %v270_v24 = vrot.slane %v1538_v8, 3  ;;  %vm1045_vm5 = vcmask 1043456  }
  0x17   :  { %1320 = vmatpush3.bf16.msra.mxu1 %v1319_v5  ;;  %v269_v16 = vld [vmem:[#allocation2 + $0x180] sm:$0xff]  ;;  %v1313_v17 = vpack.c.bf16 %v35_v15, %v34_v14  ;;  %v36_v18 = vld [vmem:[#allocation2 + $0x118] sm:$0xff]  ;;  %v421_v23 = vld [vmem:[#allocation2 + $0x8] sm:$0xff]  ;;  %vm1068_vm6 = vcmask 523264   ;;  %s1491_s8 = smov [#allocation5]  }
  0x18   :  { %1321 = vmatprep.subr.bf16.mxu1 %v1486_v0  ;;  %v37_v19 = vld [vmem:[#allocation2 + $0x120] sm:$0xff]  ;;  %v1334_v21 = vpack.c.bf16 %v269_v16, %v268_v13  ;;  %v422_v26 = vld [vmem:[#allocation2 + $0x10] sm:$0xff]  ;;  %v423_v27 = vld [vmem:[#allocation2 + $0x18] sm:$0xff]  ;;  %s1077_s9 = sshll.u32 %s1491_s8, 4  ;;  %s1078_s9 = int_to_ptr.vmem [resolvable:$true] %s1077_s9 }
  0x19   :  { %1314 = vmatpush3.bf16.msra.mxu0 %v1313_v17  ;;  %v1316_v20 = vpack.c.bf16 %v37_v19, %v36_v18  ;;  %v420_v22 = vld [vmem:[#allocation2] sm:$0xff]  ;;  %v1346_v28 = vpack.c.bf16 %v423_v27, %v422_v26  ;;  %v425_v30 = vld [vmem:[#allocation2 + $0x28] sm:$0xff]  ;;  %v426_v32 = vld [vmem:[#allocation2 + $0x30] sm:$0xff]  ;;  %v193_v17 = vrot.slane %v1538_v8, 2  ;;  %v347_v26 = vrot.slane %v1538_v8, 4  ;;  %s1457_s10 = scalar_lea.vmem %s1078_s9, 16  ;;  %p1462_p9 = scmp.lt.s32.totalorder %s1078_s9, %s1078_s9 }
  0x1a   :  { %1315 = vmatprep.subr.bf16.mxu0 %v1486_v0  ;;  %v1343_v25 = vpack.c.bf16 %v421_v23, %v420_v22  ;;  %v424_v29 = vld [vmem:[#allocation2 + $0x20] sm:$0xff]  ;;  %v427_v33 = vld [vmem:[#allocation2 + $0x38] sm:$0xff]  ;;  %v429_v36 = vld [vmem:[#allocation2 + $0x48] sm:$0xff]  ;;  %p1458_p8 = scmp.ne.s32.totalorder %s1078_s9, %s1457_s10  ;;  %s1461_s11 = scalar_lea.vmem %s1078_s9, 32 }
  0x1b   :  { %1323 = vmatpush3.bf16.msra.mxu1 %v1322_v7  ;;  %v1349_v31 = vpack.c.bf16 %v425_v30, %v424_v29  ;;  %v1352_v34 = vpack.c.bf16 %v427_v33, %v426_v32  ;;  %v428_v35 = vld [vmem:[#allocation2 + $0x40] sm:$0xff]  ;;  %v430_v38 = vld [vmem:[#allocation2 + $0x50] sm:$0xff]  ;;  %v431_v39 = vld [vmem:[#allocation2 + $0x58] sm:$0xff]  ;;  %p1463_p10 = scmp.lt.s32.totalorder %s1461_s11, %s1457_s10 }
  0x1c   :  { %1330 = vmatprep.subr.bf16.mxu1 %v1486_v0  ;;  %v1355_v37 = vpack.c.bf16 %v429_v36, %v428_v35  ;;  %v1358_v40 = vpack.c.bf16 %v431_v39, %v430_v38  ;;  %v432_v41 = vld [vmem:[#allocation2 + $0x60] sm:$0xff]  ;;  %v433_v42 = vld [vmem:[#allocation2 + $0x68] sm:$0xff]  ;;  %v434_v44 = vld [vmem:[#allocation2 + $0x70] sm:$0xff] }
  0x1d   :  { %1317 = vmatpush3.bf16.msra.mxu0 %v1316_v20  ;;  %v1361_v43 = vpack.c.bf16 %v433_v42, %v432_v41  ;;  %v435_v45 = vld [vmem:[#allocation2 + $0x78] sm:$0xff]  ;;  %v31_v47 = vld [vmem:[%s1688_s0] sm:$0x1]  ;;  %s1489_s0 = smov 32   ;;  %v189_v7 = vld [vmem:[#allocation2 + $0x148] sm:$0xff]  ;;  %p1464_p11 = por %p1463_p10, %p1462_p9 }
  0x1e   :  { %1187 = vmatmul.mubr.msk.f32.vlgmr.msra.gmra.mrb[0].mxu1 %vm38_vm1, %v116_v11  ;;  %1324 = vmatprep.subr.bf16.mxu0 %v1486_v0  ;;  %v1364_v46 = vpack.c.bf16 %v435_v45, %v434_v44  ;;  %v1579_v54 = vld [vmem:[#allocation2 + $0x80] sm:$0xff]  ;;  %v190_v9 = vld [vmem:[#allocation2 + $0x150] sm:$0xff]  ;;  %v191_v10 = vld [vmem:[#allocation2 + $0x158] sm:$0xff] }
  0x1f   :  { %1332 = vmatpush3.bf16.msra.mxu1 %v1331_v12  ;;  %1208 = vmatprep.mubr.msk.f32.mxu1 %vm1487_vm0, %v1488_v1  ;;  %v1325_v12 = vpack.c.bf16 %v190_v9, %v189_v7  ;;  %v192_v13 = vld [vmem:[#allocation2 + $0x160] sm:$0xff]  ;;  %v343_v15 = vld [vmem:[#allocation2 + $0x188] sm:$0xff]  ;;  %v344_v16 = vld [vmem:[#allocation2 + $0x190] sm:$0xff]  ;;  %v609_v38 = vrot.slane %v1579_v54, 1  ;;  %p1465_p12 = pnand %p1464_p11, %p1458_p8 }
  0x20   :  { %1333 = vmatprep.subr.bf16.mxu1 %v1486_v0  ;;  %1176 = vmatmul.mubr.msk.f32.vlgmr.msra.gmra.mrb[0].mxu0 %vm38_vm1, %v1538_v8  ;;  %v1328_v14 = vpack.c.bf16 %v192_v13, %v191_v10  ;;  %v1337_v18 = vpack.c.bf16 %v344_v16, %v343_v15  ;;  %v345_v19 = vld [vmem:[#allocation2 + $0x198] sm:$0xff]  ;;  %v346_v20 = vld [vmem:[#allocation2 + $0x1a0] sm:$0xff]  ;;  %v529_v23 = vld [vmem:[#allocation2 + $0x88] sm:$0xff] }
  0x21   :  { %1197 = vmatprep.mubr.msk.f32.mxu0 %vm1487_vm0, %v1488_v1  ;;  %1326 = vmatpush3.bf16.msra.mxu0 %v1325_v12  ;;  %v1340_v22 = vpack.c.bf16 %v346_v20, %v345_v19  ;;  %v532_v29 = vld [vmem:[#allocation2 + $0xa0] sm:$0xff] }
  0x22   :  { %1327 = vmatprep.subr.bf16.mxu0 %v1486_v0 }
  0x23   :  { %1335 = vmatpush3.bf16.msra.mxu1 %v1334_v21 }
  0x24   :  { %1342 = vmatprep.subr.bf16.mxu1 %v1486_v0 }
  0x25   :  { %1329 = vmatpush3.bf16.msra.mxu0 %v1328_v14 }
  0x26   :  { %1209 = vmatmul.mubr.msk.f32.vlgmr.msra.gmra.mrb[2].mxu1 %vm38_vm1, %v270_v24  ;;  %1336 = vmatprep.subr.bf16.mxu0 %v1486_v0 }
  0x27   :  { %1344 = vmatpush3.bf16.msra.mxu1 %v1343_v25  ;;  %1254 = vmatprep.mubr.msk.f32.mxu1 %vm1487_vm0, %v1488_v1  ;;  %v530_v25 = vld [vmem:[#allocation2 + $0x90] sm:$0xff] }
  0x28   :  { %1345 = vmatprep.subr.bf16.mxu1 %v1486_v0  ;;  %1198 = vmatmul.mubr.msk.f32.vlgmr.msra.gmra.mrb[2].mxu0 %vm38_vm1, %v193_v17  ;;  %v1367_v27 = vpack.c.bf16 %v530_v25, %v529_v23  ;;  %v740_v23 = vld [vmem:[#allocation2 + $0xc8] sm:$0xff]  ;;  %v741_v25 = vld [vmem:[#allocation2 + $0xd0] sm:$0xff] }
  0x29   :  { %1338 = vmatpush3.bf16.msra.mxu0 %v1337_v18  ;;  %1219 = vmatprep.mubr.msk.f32.mxu0 %vm1487_vm0, %v1488_v1 }
  0x2a   :  { %1339 = vmatprep.subr.bf16.mxu0 %v1486_v0 }
  0x2b   :  { %1347 = vmatpush3.bf16.msra.mxu1 %v1346_v28  ;;  %v531_v28 = vld [vmem:[#allocation2 + $0x98] sm:$0xff] }
  0x2c   :  { %1348 = vmatprep.subr.bf16.mxu1 %v1486_v0  ;;  %v1370_v30 = vpack.c.bf16 %v532_v29, %v531_v28  ;;  %v1379_v29 = vpack.c.bf16 %v741_v25, %v740_v23  ;;  %v950_v25 = vld [vmem:[#allocation2 + $0x1a8] sm:$0xff] }
  0x2d   :  { %1341 = vmatpush3.bf16.msra.mxu0 %v1340_v22 }
  0x2e   :  { %1366 = vmatprep.subr.bf16.mxu0 %v1486_v0 }
  0x2f   :  { %1350 = vmatpush3.bf16.msra.mxu1 %v1349_v31 }
  0x30   :  { %1351 = vmatprep.subr.bf16.mxu1 %v1486_v0  ;;  %1220 = vmatmul.mubr.msk.f32.vlgmr.msra.gmra.mrb[4].mxu0 %vm38_vm1, %v347_v26 }
  0x31   :  { %1368 = vmatpush3.bf16.msra.mxu0 %v1367_v27  ;;  %1265 = vmatprep.mubr.msk.f32.mxu0 %vm1487_vm0, %v1488_v1  ;;  %v742_v27 = vld [vmem:[#allocation2 + $0xd8] sm:$0xff] }
  0x32   :  { %1369 = vmatprep.subr.bf16.mxu0 %v1486_v0 }
  0x33   :  { %1353 = vmatpush3.bf16.msra.mxu1 %v1352_v34 }
  0x34   :  { %1354 = vmatprep.subr.bf16.mxu1 %v1486_v0 }
  0x35   :  { %1371 = vmatpush3.bf16.msra.mxu0 %v1370_v30  ;;  %v743_v30 = vld [vmem:[#allocation2 + $0xe0] sm:$0xff] }
  0x36   :  { %1372 = vmatprep.subr.bf16.mxu0 %v1486_v0 }
  0x37   :  { %1356 = vmatpush3.bf16.msra.mxu1 %v1355_v37 }
  0x38   :  { %1357 = vmatprep.subr.bf16.mxu1 %v1486_v0 }
  0x3b   :  { %1359 = vmatpush3.bf16.msra.mxu1 %v1358_v40 }
  0x3c   :  { %1360 = vmatprep.subr.bf16.mxu1 %v1486_v0 }
  0x3f   :  { %1362 = vmatpush3.bf16.msra.mxu1 %v1361_v43 }
  0x40   :  { %1363 = vmatprep.subr.bf16.mxu1 %v1486_v0 }
  0x43   :  { %1365 = vmatpush3.bf16.msra.mxu1 %v1364_v46 }
  0x44   :  { %1390 = vmatprep.subr.bf16.mxu1 %v1486_v0 }
  0x46   :  { %1255 = vmatmul.mubr.f32.vlgmr.msra.gmra.mrb[4].mxu1 %v31_v47 }
  0x47   :  { %1309 = vmatprep.mubr.msk.f32.mxu1 %vm1487_vm0, %v1488_v1 }
  0xf1   :  { %v1575_v48 = vpop.f32.mrb[0].mxu1 }
  0xf2   :  { %v1188_v49 = vpop.f32.mrb[1].mxu1 }
  0xf3   :  { %v108_v50 = vpop.f32.mrb[0].mxu0 }
  0xf4   :  { %v1177_v52 = vpop.f32.mrb[1].mxu0 }
  0xf9   :  { %v1577_v51 = vpop.f32.mrb[2].mxu1 }
  0xfa   :  { %v1210_v53 = vpop.f32.mrb[3].mxu1 }
  0xfb   :  { %v262_v33 = vpop.f32.mrb[2].mxu0 }
  0xfc   :  { %v1199_v34 = vpop.f32.mrb[3].mxu0 }
 0x103   :  { %v1611_v35 = vpop.f32.mrb[4].mxu0 }
 0x104   :  { %v1221_v36 = vpop.f32.mrb[5].mxu0 }
 0x119   :  { %v502_v55 = vpop.f32.mrb[4].mxu1 }
 0x11a   :  { %v503_v56 = vadd.f32 %v502_v55, %v108_v50  ;;  %v1256_v57 = vpop.f32.mrb[5].mxu1  ;;  %v635_v55 = vld [vmem:[#allocation2 + $0xa8] sm:$0xff] }
 0x11b   :  { %v637_v57 = vld [vmem:[#allocation2 + $0xb8] sm:$0xff] }
 0x11c   :  { %v506_v58 = vadd.f32 %v503_v56, %v1579_v54  ;;  %v636_v56 = vld [vmem:[#allocation2 + $0xb0] sm:$0xff] }
 0x11e   :  { %1405 = vtanh.f32 %v506_v58  ;;  %v507_v60 = vmul.f32 0.5, %v506_v58  ;;  %v1373_v58 = vpack.c.bf16 %v636_v56, %v635_v55  ;;  %v845_v56 = vld [vmem:[#allocation2 + $0xe8] sm:$0xff] }
 0x120   :  { %1407 = vtanh.f32 %v507_v60 }
 0x128   :  { %v1406_v59 = vpop.eup %1405 }
 0x129   :  { %514 = vrot.lane.b32.xlu0 %v1406_v59, %s1489_s0  ;;  %v638_v59 = vld [vmem:[#allocation2 + $0xc0] sm:$0xff] }
 0x12a   :  { %v1408_v61 = vpop.eup %1407  ;;  %v1376_v60 = vpack.c.bf16 %v638_v59, %v637_v57  ;;  %v846_v57 = vld [vmem:[#allocation2 + $0xf0] sm:$0xff] }
 0x12b   :  { %v509_v62 = vadd.f32 1.0, %v1408_v61  ;;  %v1385_v59 = vpack.c.bf16 %v846_v57, %v845_v56 }
 0x12d   :  { %v510_v63 = vmul.f32 0.5, %v509_v62 }
 0x12f   :  { %v512_v4 = vmul.f32 %v510_v63, %v1538_v8 }
 0x19b   :  { %v515_v2 = vpop.permute.xlu0 %514 }
 0x19c   :  { %v517_v3 = vmul.f32 %v515_v2, %v510_v63  ;;  %v714_v2 = vrot.slane %v1579_v54, 2 }
 0x19e   :  { %519 = vrot.lane.b32.xlu0 %v517_v3, %s1489_s0 }
 0x210   :  { %v520_v5 = vpop.permute.xlu0 %519 }
 0x211   :  { %v1585_v6 = vadd.f32 %v520_v5, %v512_v4 }
 0x213   :  { %1409 = vtanh.f32 %v1585_v6 }
 0x21d   :  { %v1410_v21 = vpop.eup %1409 }
 0x21e   :  { %525 = vrot.lane.b32.xlu1 %v1410_v21, %s1489_s0 }
 0x290   :  { %v526_v31 = vpop.permute.xlu1 %525 }
 0x291   :  { %v1607_v32 = vmul.f32 %v526_v31, %v510_v63 }
 0x293   :  { %534 = vrot.lane.b32.xlu1 %v1607_v32, %s1490_s5 }
 0x305   :  { %v535_v37 = vpop.permute.xlu1 %534 }
 0x306   :  { %1266 = vmatmul.mubr.msk.f32.vlgmr.msra.gmra.mrb[6].mxu0 %vm38_vm1, %v535_v37 }
 0x307   :  { %1276 = vmatprep.mubr.msk.f32.mxu0 %vm1487_vm0, %v1488_v1  ;;  %1374 = vmatpush3.bf16.msra.mxu0 %v1373_v58  ;;  %v847_v58 = vld [vmem:[#allocation2 + $0xf8] sm:$0xff] }
 0x308   :  { %1375 = vmatprep.subr.bf16.mxu0 %v1486_v0 }
 0x30b   :  { %1377 = vmatpush3.bf16.msra.mxu0 %v1376_v60  ;;  %v848_v60 = vld [vmem:[#allocation2 + $0x100] sm:$0xff] }
 0x30c   :  { %1378 = vmatprep.subr.bf16.mxu0 %v1486_v0 }
 0x3d9   :  { %v604_v39 = vpop.f32.mrb[6].mxu0 }
 0x3da   :  { %v605_v40 = vadd.f32 %v604_v39, %v1575_v48  ;;  %v1267_v41 = vpop.f32.mrb[7].mxu0 }
 0x3db   :  { %v819_v41 = vrot.slane %v1579_v54, 3 }
 0x3dc   :  { %v611_v42 = vadd.f32 %v609_v38, %v605_v40 }
 0x3de   :  { %1411 = vtanh.f32 %v611_v42  ;;  %v612_v44 = vmul.f32 0.5, %v611_v42 }
 0x3e0   :  { %1413 = vtanh.f32 %v612_v44 }
 0x3e8   :  { %v1412_v43 = vpop.eup %1411 }
 0x3e9   :  { %620 = vrot.lane.b32.xlu0 %v1412_v43, %s1489_s0 }
 0x3ea   :  { %v1414_v45 = vpop.eup %1413 }
 0x3eb   :  { %v614_v46 = vadd.f32 1.0, %v1414_v45 }
 0x3ed   :  { %v615_v47 = vmul.f32 0.5, %v614_v46 }
 0x3ef   :  { %v618_v52 = vmul.f32 %v615_v47, %v116_v11 }
 0x45b   :  { %v621_v49 = vpop.permute.xlu0 %620 }
 0x45c   :  { %v623_v50 = vmul.f32 %v621_v49, %v615_v47 }
 0x45e   :  { %625 = vrot.lane.b32.xlu1 %v623_v50, %s1489_s0 }
 0x4d0   :  { %v626_v53 = vpop.permute.xlu1 %625 }
 0x4d1   :  { %v628_v48 = vadd.f32 %v626_v53, %v618_v52 }
 0x4d3   :  { %1415 = vtanh.f32 %v628_v48  ;;  %v1048_v19 = vrot.slane %v628_v48, 7 }
 0x4d5   :  { %v1059_v28 = vsel %vm1039_vm2, %v1585_v6, %v1048_v19 }
 0x4dd   :  { %v1416_v61 = vpop.eup %1415 }
 0x4de   :  { %631 = vrot.lane.b32.xlu0 %v1416_v61, %s1489_s0 }
 0x550   :  { %v632_v62 = vpop.permute.xlu0 %631 }
 0x551   :  { %v634_v11 = vmul.f32 %v632_v62, %v615_v47  ;;  %v1388_v62 = vpack.c.bf16 %v848_v60, %v847_v58 }
 0x553   :  { %640 = vrot.lane.b32.xlu1 %v634_v11, %s1490_s5  ;;  %v1031_v34 = vrot.slane %v634_v11, 7 }
 0x555   :  { %v1040_v6 = vsel %vm1039_vm2, %v1607_v32, %v1031_v34 }
 0x5c5   :  { %v641_v63 = vpop.permute.xlu1 %640 }
 0x5c6   :  { %1277 = vmatmul.mubr.msk.f32.vlgmr.msra.gmra.mrb[8].mxu0 %vm38_vm1, %v641_v63 }
 0x5c7   :  { %1287 = vmatprep.mubr.msk.f32.mxu0 %vm1487_vm0, %v1488_v1  ;;  %1380 = vmatpush3.bf16.msra.mxu0 %v1379_v29 }
 0x5c8   :  { %1381 = vmatprep.subr.bf16.mxu0 %v1486_v0 }
 0x699   :  { %v710_v3 = vpop.f32.mrb[8].mxu0 }
 0x69a   :  { %v711_v4 = vadd.f32 %v710_v3, %v262_v33  ;;  %v1278_v5 = vpop.f32.mrb[9].mxu0  ;;  %v1382_v33 = vpack.c.bf16 %v743_v30, %v742_v27  ;;  %v951_v27 = vld [vmem:[#allocation2 + $0x1b0] sm:$0xff]  ;;  %v953_v30 = vld [vmem:[#allocation2 + $0x1c0] sm:$0xff] }
 0x69b   :  { %v924_v5 = vrot.slane %v1579_v54, 4  ;;  %v1391_v29 = vpack.c.bf16 %v951_v27, %v950_v25 }
 0x69c   :  { %v716_v7 = vadd.f32 %v714_v2, %v711_v4  ;;  %1383 = vmatpush3.bf16.msra.mxu0 %v1382_v33 }
 0x69d   :  { %1384 = vmatprep.subr.bf16.mxu0 %v1486_v0  ;;  %1392 = vmatpush3.bf16.msra.mxu1 %v1391_v29 }
 0x69e   :  { %1417 = vtanh.f32 %v716_v7  ;;  %v717_v10 = vmul.f32 0.5, %v716_v7  ;;  %1393 = vmatprep.subr.bf16.mxu1 %v1486_v0 }
 0x6a0   :  { %1419 = vtanh.f32 %v717_v10 }
 0x6a8   :  { %v1418_v9 = vpop.eup %1417 }
 0x6a9   :  { %725 = vrot.lane.b32.xlu0 %v1418_v9, %s1489_s0 }
 0x6aa   :  { %v1420_v12 = vpop.eup %1419 }
 0x6ab   :  { %v719_v13 = vadd.f32 1.0, %v1420_v12 }
 0x6ad   :  { %v720_v14 = vmul.f32 0.5, %v719_v13 }
 0x6af   :  { %v723_v18 = vmul.f32 %v720_v14, %v193_v17 }
 0x71b   :  { %v726_v15 = vpop.permute.xlu0 %725 }
 0x71c   :  { %v728_v16 = vmul.f32 %v726_v15, %v720_v14 }
 0x71e   :  { %730 = vrot.lane.b32.xlu1 %v728_v16, %s1489_s0 }
 0x790   :  { %v731_v20 = vpop.permute.xlu1 %730 }
 0x791   :  { %v733_v21 = vadd.f32 %v731_v20, %v723_v18 }
 0x793   :  { %1421 = vtanh.f32 %v733_v21  ;;  %v1051_v22 = vrot.slane %v733_v21, 6 }
 0x795   :  { %v1060_v31 = vsel %vm1041_vm3, %v1059_v28, %v1051_v22  ;;  %v952_v28 = vld [vmem:[#allocation2 + $0x1b8] sm:$0xff] }
 0x79d   :  { %v1422_v17 = vpop.eup %1421 }
 0x79e   :  { %736 = vrot.lane.b32.xlu0 %v1422_v17, %s1489_s0 }
 0x810   :  { %v737_v36 = vpop.permute.xlu0 %736 }
 0x811   :  { %v739_v37 = vmul.f32 %v737_v36, %v720_v14 }
 0x813   :  { %v1033_v38 = vrot.slane %v739_v37, 6  ;;  %745 = vrot.lane.b32.xlu1 %v739_v37, %s1490_s5 }
 0x815   :  { %v1042_v39 = vsel %vm1041_vm3, %v1040_v6, %v1033_v38  ;;  %v954_v6 = vld [vmem:[#allocation2 + $0x1c8] sm:$0x1] }
 0x885   :  { %v746_v40 = vpop.permute.xlu1 %745 }
 0x886   :  { %1288 = vmatmul.mubr.msk.f32.vlgmr.msra.gmra.mrb[10].mxu0 %vm38_vm1, %v746_v40 }
 0x887   :  { %1298 = vmatprep.mubr.msk.f32.mxu0 %vm1487_vm0, %v1488_v1  ;;  %1386 = vmatpush3.bf16.msra.mxu0 %v1385_v59 }
 0x888   :  { %1387 = vmatprep.subr.bf16.mxu0 %v1486_v0 }
 0x88b   :  { %1389 = vmatpush3.bf16.msra.mxu0 %v1388_v62 }
 0x959   :  { %v815_v42 = vpop.f32.mrb[10].mxu0 }
 0x95a   :  { %v816_v43 = vadd.f32 %v815_v42, %v1577_v51  ;;  %v1289_v44 = vpop.f32.mrb[11].mxu0 }
 0x95c   :  { %v821_v45 = vadd.f32 %v819_v41, %v816_v43 }
 0x95e   :  { %1423 = vtanh.f32 %v821_v45  ;;  %v822_v32 = vmul.f32 0.5, %v821_v45 }
 0x960   :  { %1425 = vtanh.f32 %v822_v32 }
 0x968   :  { %v1424_v46 = vpop.eup %1423 }
 0x969   :  { %830 = vrot.lane.b32.xlu0 %v1424_v46, %s1489_s0 }
 0x96a   :  { %v1426_v47 = vpop.eup %1425 }
 0x96b   :  { %v824_v49 = vadd.f32 1.0, %v1426_v47 }
 0x96d   :  { %v825_v50 = vmul.f32 0.5, %v824_v49 }
 0x96f   :  { %v828_v1 = vmul.f32 %v825_v50, %v270_v24 }
 0x9db   :  { %v831_v52 = vpop.permute.xlu0 %830 }
 0x9dc   :  { %v833_v53 = vmul.f32 %v831_v52, %v825_v50 }
 0x9de   :  { %835 = vrot.lane.b32.xlu1 %v833_v53, %s1489_s0 }
 0xa50   :  { %v836_v48 = vpop.permute.xlu1 %835 }
 0xa51   :  { %v838_v51 = vadd.f32 %v836_v48, %v828_v1 }
 0xa53   :  { %1427 = vtanh.f32 %v838_v51  ;;  %v1054_v55 = vrot.slane %v838_v51, 5 }
 0xa55   :  { %v1061_v61 = vsel %vm1043_vm4, %v1060_v31, %v1054_v55  ;;  %v1394_v31 = vpack.c.bf16 %v953_v30, %v952_v28 }
 0xa57   :  { %1395 = vmatpush3.bf16.msra.mxu1 %v1394_v31 }
 0xa5d   :  { %v1428_v11 = vpop.eup %1427 }
 0xa5e   :  { %841 = vrot.lane.b32.xlu0 %v1428_v11, %s1489_s0 }
 0xad0   :  { %v842_v24 = vpop.permute.xlu0 %841 }
 0xad1   :  { %v844_v63 = vmul.f32 %v842_v24, %v825_v50 }
 0xad3   :  { %v1035_v2 = vrot.slane %v844_v63, 5  ;;  %850 = vrot.lane.b32.xlu1 %v844_v63, %s1490_s5 }
 0xad5   :  { %v1044_v3 = vsel %vm1043_vm4, %v1042_v39, %v1035_v2 }
 0xb45   :  { %v851_v4 = vpop.permute.xlu1 %850 }
 0xb46   :  { %1299 = vmatmul.mubr.msk.f32.vlgmr.msra.gmra.mrb[12].mxu0 %vm38_vm1, %v851_v4 }
 0xc19   :  { %v920_v7 = vpop.f32.mrb[12].mxu0 }
 0xc1a   :  { %v921_v9 = vadd.f32 %v920_v7, %v1611_v35  ;;  %v1300_v10 = vpop.f32.mrb[13].mxu0 }
 0xc1c   :  { %v926_v12 = vadd.f32 %v924_v5, %v921_v9 }
 0xc1e   :  { %1429 = vtanh.f32 %v926_v12  ;;  %v927_v14 = vmul.f32 0.5, %v926_v12 }
 0xc20   :  { %1431 = vtanh.f32 %v927_v14 }
 0xc28   :  { %v1430_v13 = vpop.eup %1429 }
 0xc29   :  { %935 = vrot.lane.b32.xlu0 %v1430_v13, %s1489_s0 }
 0xc2a   :  { %v1432_v15 = vpop.eup %1431 }
 0xc2b   :  { %v929_v16 = vadd.f32 1.0, %v1432_v15 }
 0xc2d   :  { %v930_v18 = vmul.f32 0.5, %v929_v16 }
 0xc2f   :  { %v933_v54 = vmul.f32 %v930_v18, %v347_v26 }
 0xc9b   :  { %v936_v19 = vpop.permute.xlu0 %935 }
 0xc9c   :  { %v938_v20 = vmul.f32 %v936_v19, %v930_v18 }
 0xc9e   :  { %940 = vrot.lane.b32.xlu1 %v938_v20, %s1489_s0 }
 0xd10   :  { %v941_v21 = vpop.permute.xlu1 %940 }
 0xd11   :  { %v943_v35 = vadd.f32 %v941_v21, %v933_v54 }
 0xd13   :  { %1433 = vtanh.f32 %v943_v35  ;;  %v1057_v22 = vrot.slane %v943_v35, 4 }
 0xd15   :  { %v1062_v23 = vsel %vm1045_vm5, %v1061_v61, %v1057_v22 }
 0xd1d   :  { %v1434_v33 = vpop.eup %1433 }
 0xd1e   :  { %946 = vrot.lane.b32.xlu0 %v1434_v33, %s1489_s0 }
 0xd90   :  { %v947_v8 = vpop.permute.xlu0 %946 }
 0xd91   :  { %v949_v26 = vmul.f32 %v947_v8, %v930_v18 }
 0xd93   :  { %v1037_v17 = vrot.slane %v949_v26, 4  ;;  %956 = vrot.lane.b32.xlu1 %v949_v26, %s1490_s5 }
 0xd95   :  { %v1046_v34 = vsel %vm1045_vm5, %v1044_v3, %v1037_v17 }
 0xd96   :  { %1064 = vrot.lane.b32.xlu0 %v1046_v34, %s1490_s5 }
 0xe05   :  { %v957_v36 = vpop.permute.xlu1 %956 }
 0xe06   :  { %1310 = vmatmul.mubr.msk.f32.vlgmr.msra.gmra.mrb[6].mxu1 %vm38_vm1, %v957_v36 }
 0xe08   :  { %v1065_v37 = vpop.permute.xlu0 %1064 }
 0xe09   :  { %v1067_v0 = vsel %vm38_vm1, %v1065_v37, %v1062_v23 }
 0xe0a   :  { %v1069_v38 = vsel %vm1068_vm6, %v1067_v0, 0.0 }
 0xe0b   :  { %1070 = vst [vmem:[%s1692_s4] sm:$0x1f] %v1069_v38 }
 0xed9   :  { %v1026_v39 = vpop.f32.mrb[6].mxu1 }
 0xeda   :  { %v1027_v40 = vadd.f32 %v1026_v39, %v954_v6  ;;  %v1311_v41 = vpop.f32.mrb[7].mxu1 }
 0xedc   :  { %1030 = vst [vmem:[#allocation5] sm:$0x1] %v1027_v40 }
 0xedd   :  { %1468 = shalt.err (!%p1465_p12)
}
 0xede   :  { %s1469_s4 = scalar_lea.hbm %s1691_s3, 16 }
 0xedf   :  { %p1470_p13 = scmp.ne.s32.totalorder %s1691_s3, %s1469_s4  ;;  %p1473_p0 = scmp.lt.u32.totalorder %s1469_s4, %s1691_s3 }
 0xee1   :  { %p1475_p1 = pnand %p1473_p0, %p1470_p13 }
 0xee3   :  { %1478 = shalt.err (!%p1475_p1)
}
 0xee4   :  { %1080 = dma.vmem_to_hbm [thread:$0]  %s1078_s9, 16, %s1691_s3, [#allocation4]  }
 0xee5   :  { %1481 = dma.done.wait [#allocation4], 16  }
 0xee6   :  { %1482 = vsyncadd [#allocation4], 4294967280 }
 0xee7   :  { %1088 = vsyncpa [#allocation3], 1 }
 0xee8   :  { %1089 = vsyncpa [#allocation4], 1 }

</bundles_post_ra>
